<compile_context>
chip_gen: v5e
topology: v5e:2x2
jax: 0.10.0
libtpu: 0.0.40
codegen_flags: <defaults>
</compile_context>

<pallas_src>
import jax
import jax.numpy as jnp
from jax.experimental import pallas as pl
from jax.experimental.pallas import tpu as pltpu

IN_F, H1_F, H2_F, OUT_F = 2, 10, 10, 4
GRP = 4                      # batch elements packed per lane column
HID_PAD = 16                 # per-group hidden padding (sublane friendly)
IN_ROWS = GRP * IN_F         # 8
HID_ROWS = GRP * HID_PAD     # 64
OUT_ROWS = GRP * OUT_F       # 16


def _mlp_kernel(x_ref, w1_ref, w2_ref, w3_ref, b1_ref, b2_ref, b3_ref, o_ref):
    # x_ref: (8, TB) f32 — packed activations (4 batch elems x 2 features on sublanes).
    x = x_ref[...]

    # Layer 1 (block-diagonal over the 4 packed groups) + bias + ReLU.
    h = jnp.dot(w1_ref[...], x, preferred_element_type=jnp.float32)     # (64, TB)
    h = jnp.maximum(h + b1_ref[...], 0.0)

    # Layer 2.
    h = jnp.dot(w2_ref[...], h, preferred_element_type=jnp.float32)     # (64, TB)
    h = jnp.maximum(h + b2_ref[...], 0.0)

    # Layer 3: (16, 64) weight maps straight to the dense (16, TB) output slab.
    h = jnp.dot(w3_ref[...], h, preferred_element_type=jnp.float32)     # (16, TB)
    o_ref[...] = h + b3_ref[...]


def _round_up(n, m):
    return ((n + m - 1) // m) * m


def _cdiv(a, b):
    return -(-a // b)


def _pack_weights(p):
    """Block-diagonal replication so one matmul handles all GRP packed groups."""
    w1 = jnp.zeros((HID_ROWS, IN_ROWS), jnp.float32)
    w2 = jnp.zeros((HID_ROWS, HID_ROWS), jnp.float32)
    w3 = jnp.zeros((OUT_ROWS, HID_ROWS), jnp.float32)
    b1 = jnp.zeros((HID_ROWS, 1), jnp.float32)
    b2 = jnp.zeros((HID_ROWS, 1), jnp.float32)
    for g in range(GRP):
        w1 = w1.at[g * HID_PAD:g * HID_PAD + H1_F,
                   g * IN_F:(g + 1) * IN_F].set(p["w1"].astype(jnp.float32))
        w2 = w2.at[g * HID_PAD:g * HID_PAD + H2_F,
                   g * HID_PAD:g * HID_PAD + H1_F].set(p["w2"].astype(jnp.float32))
        w3 = w3.at[g * OUT_F:(g + 1) * OUT_F,
                   g * HID_PAD:g * HID_PAD + H2_F].set(p["w3"].astype(jnp.float32))
        b1 = b1.at[g * HID_PAD:g * HID_PAD + H1_F, 0].set(p["b1"].astype(jnp.float32))
        b2 = b2.at[g * HID_PAD:g * HID_PAD + H2_F, 0].set(p["b2"].astype(jnp.float32))
    b3 = jnp.tile(p["b3"].astype(jnp.float32), GRP).reshape(OUT_ROWS, 1)
    return w1, w2, w3, b1, b2, b3


def _choose_tiling(B, tile_cols):
    """Pick (num_tiles, tile_width_cols) minimizing padded columns."""
    cols = _cdiv(max(B, 1), GRP)            # packed columns actually needed
    cols = _round_up(cols, 128)             # lane granularity
    n = max(1, _cdiv(cols, tile_cols))
    if n == 1 and cols >= 256:
        n = 2                               # feed both TensorCores on v7x
    tile = _round_up(_cdiv(cols, n), 128)
    return n, tile


def bayesian_network_forward(x, params, *, tile_cols=16384):
    """Eval-mode (sample=False) forward.  x: (B, 2) float -> (B, 4) float32.

    tile_cols = packed lane columns per grid step (1 column = 4 batch elements).
    Default 16384 -> ~1.5 MiB of HBM DMA per step (overhead well hidden) and
    ~12 MiB of VMEM; sweep 8192..32768 per chip generation if benchmarking.
    """
    B = x.shape[0]
    n, tile = _choose_tiling(B, tile_cols)
    cols_total = n * tile
    Bp = cols_total * GRP

    # Pack 4 batch elements per lane column: column j, sublane 2g+f holds
    # feature f of batch element 4j+g.  The HBM slab is fully sublane-dense.
    xp = jnp.zeros((Bp, IN_F), jnp.float32).at[:B].set(x.astype(jnp.float32))
    x_packed = xp.reshape(cols_total, IN_ROWS).T                 # (8, cols_total)

    w1, w2, w3, b1, b2, b3 = _pack_weights(params)

    const = lambda i: (0, 0)   # weights / biases: VMEM-resident, DMA'd once
    flops = 2 * (HID_ROWS * IN_ROWS + HID_ROWS * HID_ROWS
                 + OUT_ROWS * HID_ROWS) * cols_total
    bytes_accessed = 4 * (IN_ROWS + OUT_ROWS) * cols_total + 4 * (
        HID_ROWS * IN_ROWS + HID_ROWS * HID_ROWS + OUT_ROWS * HID_ROWS
        + 2 * HID_ROWS + OUT_ROWS)

    out = pl.pallas_call(
        _mlp_kernel,
        out_shape=jax.ShapeDtypeStruct((OUT_ROWS, cols_total), jnp.float32),
        grid=(n,),
        in_specs=[
            pl.BlockSpec((IN_ROWS, tile), lambda i: (0, i)),     # x tile (pipelined)
            pl.BlockSpec((HID_ROWS, IN_ROWS), const),            # W1 block-diag
            pl.BlockSpec((HID_ROWS, HID_ROWS), const),           # W2 block-diag
            pl.BlockSpec((OUT_ROWS, HID_ROWS), const),           # W3 packed
            pl.BlockSpec((HID_ROWS, 1), const),                  # b1 replicated
            pl.BlockSpec((HID_ROWS, 1), const),                  # b2 replicated
            pl.BlockSpec((OUT_ROWS, 1), const),                  # b3 replicated
        ],
        out_specs=pl.BlockSpec((OUT_ROWS, tile), lambda i: (0, i)),
        compiler_params=pltpu.CompilerParams(
            dimension_semantics=("parallel",),                   # megacore on v7x
            vmem_limit_bytes=48 * 1024 * 1024),                  # headroom on v5e
        cost_estimate=pl.CostEstimate(
            flops=flops, transcendentals=0, bytes_accessed=bytes_accessed),
    )(x_packed, w1, w2, w3, b1, b2, b3)

    # Unpack: out[4g+k, j] = logit k of batch element 4j+g.
    # TODO(synk): in a real pipeline keep this packed feature-major layout
    # across the model boundary; the lane-padded (B, 4) transpose below costs
    # more HBM traffic end-to-end than the kernel itself.
    return out.T.reshape(Bp, OUT_F)[:B]


def init_params(key):
    """Deterministic init mirroring BayesianLinear's mu init: U(-0.2, 0.2)."""
    ks = jax.random.split(key, 6)
    u = lambda k, shape: jax.random.uniform(k, shape, jnp.float32, -0.2, 0.2)
    return {
        "w1": u(ks[0], (H1_F, IN_F)),   # (out, in) like nn.Linear / BayesianLinear
        "b1": u(ks[1], (H1_F,)),
        "w2": u(ks[2], (H2_F, H1_F)),
        "b2": u(ks[3], (H2_F,)),
        "w3": u(ks[4], (OUT_F, H2_F)),
        "b3": u(ks[5], (OUT_F,)),
    }
    # TODO(synk): the weight-sampling path (sample=True) and the KL terms
    # (log_prior / log_variational_posterior used by sample_elbo) are
    # training-only and not part of the inference forward pass implemented here.


def _reference_forward(x, p):
    h = jnp.maximum(x @ p["w1"].T + p["b1"], 0.0)
    h = jnp.maximum(h @ p["w2"].T + p["b2"], 0.0)
    return h @ p["w3"].T + p["b3"]


if __name__ == "__main__":
    key = jax.random.PRNGKey(0)
    k_params, k_x = jax.random.split(key)
    params = init_params(k_params)

    # Demo batch matches the module's BATCH_SIZE=100 (and exercises batch/lane
    # padding).  Real benchmarking should use B in the hundreds of thousands.
    B = 100
    x = jax.random.normal(k_x, (B, IN_F), jnp.float32)

    fwd = jax.jit(bayesian_network_forward)
    out = jax.block_until_ready(fwd(x, params))

    ref = _reference_forward(x, params)
    assert out.shape == (B, OUT_F)
    # All math is f32 (typically ~1e-6 agreement); the tolerance is kept loose
    # only to cover chips whose default MXU f32 path truncates to bf16.
    assert jnp.max(jnp.abs(out - ref)) < 2e-2, "mismatch vs JAX reference"

    print("KERNEL_OK")
</pallas_src>

<mosaic_0001>
module attributes {stable_mosaic.version = 11 : i64} {
  func.func @_mlp_kernel(%arg0: i32, %arg1: memref<8x128xf32, #tpu.memory_space<vmem>>, %arg2: memref<64x8xf32, #tpu.memory_space<vmem>>, %arg3: memref<64x64xf32, #tpu.memory_space<vmem>>, %arg4: memref<16x64xf32, #tpu.memory_space<vmem>>, %arg5: memref<64x1xf32, #tpu.memory_space<vmem>>, %arg6: memref<64x1xf32, #tpu.memory_space<vmem>>, %arg7: memref<16x1xf32, #tpu.memory_space<vmem>>, %arg8: memref<16x128xf32, #tpu.memory_space<vmem>>) attributes {dimension_semantics = [#tpu.dimension_semantics<parallel>], iteration_bounds = array<i64: 1>, scalar_prefetch = 0 : i64, scratch_operands = 0 : i64, tpu.core_type = #tpu.core_type<tc>, window_params = [{transform_indices = @transform_0, window_bounds = array<i64: 8, 128>}, {pipeline_mode = #tpu.pipeline_mode<synchronous>, transform_indices = @transform_1, window_bounds = array<i64: 64, 8>}, {pipeline_mode = #tpu.pipeline_mode<synchronous>, transform_indices = @transform_2, window_bounds = array<i64: 64, 64>}, {pipeline_mode = #tpu.pipeline_mode<synchronous>, transform_indices = @transform_3, window_bounds = array<i64: 16, 64>}, {pipeline_mode = #tpu.pipeline_mode<synchronous>, transform_indices = @transform_4, window_bounds = array<i64: 64, 1>}, {pipeline_mode = #tpu.pipeline_mode<synchronous>, transform_indices = @transform_5, window_bounds = array<i64: 64, 1>}, {pipeline_mode = #tpu.pipeline_mode<synchronous>, transform_indices = @transform_6, window_bounds = array<i64: 16, 1>}, {transform_indices = @transform_7, window_bounds = array<i64: 16, 128>}]} {
    %c0 = arith.constant 0 : index
    %c0_0 = arith.constant 0 : index
    %0 = vector.load %arg1[%c0, %c0_0] : memref<8x128xf32, #tpu.memory_space<vmem>>, vector<8x128xf32>
    %c0_1 = arith.constant 0 : index
    %c0_2 = arith.constant 0 : index
    %1 = vector.load %arg2[%c0_1, %c0_2] : memref<64x8xf32, #tpu.memory_space<vmem>>, vector<64x8xf32>
    %cst = arith.constant dense<0.000000e+00> : vector<64x128xf32>
    %2 = tpu.matmul %1, %0, %cst {dimension_numbers = #tpu.dot_dimension_numbers<[1], [0], [0], [1], [0, 0, 1, 1], [], []>} : vector<64x8xf32>, vector<8x128xf32>, vector<64x128xf32> -> vector<64x128xf32>
    %c0_3 = arith.constant 0 : index
    %c0_4 = arith.constant 0 : index
    %3 = vector.load %arg5[%c0_3, %c0_4] : memref<64x1xf32, #tpu.memory_space<vmem>>, vector<64x1xf32>
    %4 = vector.broadcast %3 : vector<64x1xf32> to vector<64x128xf32>
    %5 = arith.addf %2, %4 : vector<64x128xf32>
    %cst_5 = arith.constant 0.000000e+00 : f32
    %6 = vector.broadcast %cst_5 : f32 to vector<64x128xf32>
    %7 = arith.maximumf %5, %6 : vector<64x128xf32>
    %c0_6 = arith.constant 0 : index
    %c0_7 = arith.constant 0 : index
    %8 = vector.load %arg3[%c0_6, %c0_7] : memref<64x64xf32, #tpu.memory_space<vmem>>, vector<64x64xf32>
    %cst_8 = arith.constant dense<0.000000e+00> : vector<64x128xf32>
    %9 = tpu.matmul %8, %7, %cst_8 {dimension_numbers = #tpu.dot_dimension_numbers<[1], [0], [0], [1], [0, 0, 1, 1], [], []>} : vector<64x64xf32>, vector<64x128xf32>, vector<64x128xf32> -> vector<64x128xf32>
    %c0_9 = arith.constant 0 : index
    %c0_10 = arith.constant 0 : index
    %10 = vector.load %arg6[%c0_9, %c0_10] : memref<64x1xf32, #tpu.memory_space<vmem>>, vector<64x1xf32>
    %11 = vector.broadcast %10 : vector<64x1xf32> to vector<64x128xf32>
    %12 = arith.addf %9, %11 : vector<64x128xf32>
    %cst_11 = arith.constant 0.000000e+00 : f32
    %13 = vector.broadcast %cst_11 : f32 to vector<64x128xf32>
    %14 = arith.maximumf %12, %13 : vector<64x128xf32>
    %c0_12 = arith.constant 0 : index
    %c0_13 = arith.constant 0 : index
    %15 = vector.load %arg4[%c0_12, %c0_13] : memref<16x64xf32, #tpu.memory_space<vmem>>, vector<16x64xf32>
    %cst_14 = arith.constant dense<0.000000e+00> : vector<16x128xf32>
    %16 = tpu.matmul %15, %14, %cst_14 {dimension_numbers = #tpu.dot_dimension_numbers<[1], [0], [0], [1], [0, 0, 1, 1], [], []>} : vector<16x64xf32>, vector<64x128xf32>, vector<16x128xf32> -> vector<16x128xf32>
    %c0_15 = arith.constant 0 : index
    %c0_16 = arith.constant 0 : index
    %17 = vector.load %arg7[%c0_15, %c0_16] : memref<16x1xf32, #tpu.memory_space<vmem>>, vector<16x1xf32>
    %18 = vector.broadcast %17 : vector<16x1xf32> to vector<16x128xf32>
    %19 = arith.addf %16, %18 : vector<16x128xf32>
    %c0_17 = arith.constant 0 : index
    %c0_18 = arith.constant 0 : index
    %20 = vector.load %arg8[%c0_17, %c0_18] : memref<16x128xf32, #tpu.memory_space<vmem>>, vector<16x128xf32>
    tpu.vector_store %arg8[%c0_17, %c0_18], %19 {strides = array<i32>} : memref<16x128xf32, #tpu.memory_space<vmem>>, vector<16x128xf32>,
    return
  }
  func.func @transform_0(%arg0: i32) -> (i32, i32) {
    %c0_i32 = arith.constant 0 : i32
    %c0_i32_0 = arith.constant 0 : i32
    return %c0_i32, %arg0 : i32, i32
  }
  func.func @transform_1(%arg0: i32) -> (i32, i32) {
    %c0_i32 = arith.constant 0 : i32
    %c0_i32_0 = arith.constant 0 : i32
    %c0_i32_1 = arith.constant 0 : i32
    return %c0_i32, %c0_i32_0 : i32, i32
  }
  func.func @transform_2(%arg0: i32) -> (i32, i32) {
    %c0_i32 = arith.constant 0 : i32
    %c0_i32_0 = arith.constant 0 : i32
    %c0_i32_1 = arith.constant 0 : i32
    return %c0_i32, %c0_i32_0 : i32, i32
  }
  func.func @transform_3(%arg0: i32) -> (i32, i32) {
    %c0_i32 = arith.constant 0 : i32
    %c0_i32_0 = arith.constant 0 : i32
    %c0_i32_1 = arith.constant 0 : i32
    return %c0_i32, %c0_i32_0 : i32, i32
  }
  func.func @transform_4(%arg0: i32) -> (i32, i32) {
    %c0_i32 = arith.constant 0 : i32
    %c0_i32_0 = arith.constant 0 : i32
    %c0_i32_1 = arith.constant 0 : i32
    return %c0_i32, %c0_i32_0 : i32, i32
  }
  func.func @transform_5(%arg0: i32) -> (i32, i32) {
    %c0_i32 = arith.constant 0 : i32
    %c0_i32_0 = arith.constant 0 : i32
    %c0_i32_1 = arith.constant 0 : i32
    return %c0_i32, %c0_i32_0 : i32, i32
  }
  func.func @transform_6(%arg0: i32) -> (i32, i32) {
    %c0_i32 = arith.constant 0 : i32
    %c0_i32_0 = arith.constant 0 : i32
    %c0_i32_1 = arith.constant 0 : i32
    return %c0_i32, %c0_i32_0 : i32, i32
  }
  func.func @transform_7(%arg0: i32) -> (i32, i32) {
    %c0_i32 = arith.constant 0 : i32
    %c0_i32_0 = arith.constant 0 : i32
    return %c0_i32, %arg0 : i32, i32
  }
}

</mosaic_0001>

<bundles_post_ra>
// kernel: tile.8
= control target key start
LH: loop header
LB: loop body
LE: loop exit
PB: predicated region body
PF: predicated region fallthrough
CT: control target
= control target key end

     0   :  { %s22_s0 = inlined_call_operand.vmem [shape: f32[4], index: 0, kind: input, shape index: {}]   ;;  %s23_s1 = inlined_call_operand.vmem [shape: f32[4,4], index: 1, kind: output, shape index: {}]  }
   0x1   :  { %v4_v0 = vld [vmem:[%s22_s0] ss:$0 sm:$0xff] }
   0x2   :  { %5 = vst [vmem:[%s23_s1] sm:$0xf] %v4_v0 }

// kernel: tile.0
= control target key start
LH: loop header
LB: loop body
LE: loop exit
PB: predicated region body
PF: predicated region fallthrough
CT: control target
= control target key end

     0   :  { %s34_s8 = smov 125   ;;  %s35_s9 = smov 126   ;;  %vm7_vm0 = vcmask 7168   ;;  %s61_s0 = inlined_call_operand.vmem [shape: f32[4,4], index: 0, kind: input, shape index: {}]   ;;  %s62_s1 = inlined_call_operand.vmem [shape: f32[16,1], index: 1, kind: output, shape index: {}]  }
   0x1   :  { %v4_v0 = vld [vmem:[%s61_s0] sm:$0xf]  ;;  %s33_s0 = smov 127  }
   0x2   :  { %5 = vst [vmem:[#allocation0] sm:$0xf] %v4_v0 }
   0x9   :  { %v9_v1 = vld [vmem:[#allocation0] sm:$0xf]  }
   0xa   :  { %v21_v2 = vld [vmem:[#allocation0] sm:$0xf]   ;;  %10 = vrot.lane.b32.xlu0 %v9_v1, %s33_s0 }
   0xb   :  { %22 = vrot.lane.b32.xlu1 %v21_v2, %s34_s8  ;;  %v15_v3 = vld [vmem:[#allocation0] sm:$0xf]  }
   0xc   :  { %v6_v4 = vld [vmem:[#allocation0] sm:$0xf]  }
   0xd   :  { %8 = vst.msk [vmem:[%s62_s1] ss:$4 sm:$0xf] %vm7_vm0, %v6_v4  }
  0x12   :  { %16 = vrot.lane.b32.xlu0 %v15_v3, %s35_s9 }
  0x7c   :  { %v11_v5 = vpop.permute.xlu0 %10  }
  0x7d   :  { %v23_v6 = vpop.permute.xlu1 %22   ;;  %27 = vst.msk [vmem:[%s62_s1 + $0x1] ss:$4 sm:$0xf] %vm7_vm0, %v11_v5  }
  0x7e   :  { %29 = vst.msk [vmem:[%s62_s1 + $0x3] ss:$4 sm:$0xf] %vm7_vm0, %v23_v6  }
  0x84   :  { %v17_v7 = vpop.permute.xlu0 %16  }
  0x85   :  { %28 = vst.msk [vmem:[%s62_s1 + $0x2] ss:$4 sm:$0xf] %vm7_vm0, %v17_v7  }

// kernel: bayesian_network_forward.1
= control target key start
LH: loop header
LB: loop body
LE: loop exit
PB: predicated region body
PF: predicated region fallthrough
CT: control target
= control target key end

     0   :  { %vm83_vm0 = vcmask 64512   ;;  %v367_v0 = vmov 0   ;;  %vm213_vm1 = vcmask 523264   ;;  %s543_s4 = inlined_call_operand.vmem [shape: f32[64,1], index: 4, kind: input, shape index: {}]   ;;  %s544_s0 = inlined_call_operand.vmem [shape: f32[8,128], index: 0, kind: input, shape index: {}]   ;;  %s545_s1 = inlined_call_operand.vmem [shape: f32[64,8], index: 1, kind: input, shape index: {}]   ;;  %s546_s5 = inlined_call_operand.vmem [shape: f32[64,1], index: 5, kind: input, shape index: {}]   ;;  %s547_s6 = inlined_call_operand.vmem [shape: f32[16,1], index: 6, kind: input, shape index: {}]   ;;  %s548_s2 = inlined_call_operand.vmem [shape: f32[64,64], index: 2, kind: input, shape index: {}]   ;;  %s549_s3 = inlined_call_operand.vmem [shape: f32[16,64], index: 3, kind: input, shape index: {}]   ;;  %s550_s7 = inlined_call_operand.vmem [shape: f32[16,128], index: 7, kind: output, shape index: {}]  }
   0x1   :  { %365 = vset.pattern.permute.xlu1 %v367_v0  ;;  %v40_v1 = vld [vmem:[%s543_s4 + $0x28] sm:$0xff]  ;;  %v26_v2 = vld [vmem:[%s544_s0] sm:$0xff]  ;;  %364 = vset.pattern.permute.xlu0 %v367_v0  ;;  %v42_v4 = vld [vmem:[%s543_s4 + $0x38] sm:$0xff] }
   0x2   :  { %v27_v3 = vld [vmem:[%s545_s1] sm:$0xff]  ;;  %70 = vperm.xlu1 %365, %v40_v1   ;;  %123 = vmatpush.msra.mxu0 %v26_v2  ;;  %v33_v5 = vld [vmem:[%s545_s1 + $0x30] sm:$0xff]  ;;  %v38_v6 = vld [vmem:[%s543_s4 + $0x18] sm:$0xff] }
   0x3   :  { %336 = vmatmul.msk.f32.vlgmr.msra.gmra.mxu0 %vm83_vm0, %v27_v3  ;;  %80 = vperm.xlu0 %364, %v42_v4   ;;  %v39_v7 = vld [vmem:[%s543_s4 + $0x20] sm:$0xff]  ;;  %v28_v8 = vld [vmem:[%s545_s1 + $0x8] sm:$0xff]  ;;  %v41_v9 = vld [vmem:[%s543_s4 + $0x30] sm:$0xff] }
   0x4   :  { %354 = vmatpush.msra.mxu2 %v26_v2  ;;  %366 = vset.pattern.permute.xlu2 %v367_v0  ;;  %v34_v10 = vld [vmem:[%s545_s1 + $0x38] sm:$0xff]  ;;  %v37_v11 = vld [vmem:[%s543_s4 + $0x10] sm:$0xff]  ;;  %v35_v12 = vld [vmem:[%s543_s4] sm:$0xff] }
   0x5   :  { %342 = vmatmul.msk.f32.vlgmr.msra.gmra.mxu2 %vm83_vm0, %v33_v5  ;;  %60 = vperm.xlu2 %366, %v38_v6   ;;  %v29_v13 = vld [vmem:[%s545_s1 + $0x10] sm:$0xff]  ;;  %v36_v14 = vld [vmem:[%s543_s4 + $0x8] sm:$0xff]  ;;  %v172_v15 = vld [vmem:[%s546_s5 + $0x38] sm:$0xff] }
   0x6   :  { %v170_v16 = vld [vmem:[%s546_s5 + $0x28] sm:$0xff]  ;;  %v30_v17 = vld [vmem:[%s545_s1 + $0x18] sm:$0xff]  ;;  %v171_v18 = vld [vmem:[%s546_s5 + $0x30] sm:$0xff] }
   0x7   :  { %v169_v19 = vld [vmem:[%s546_s5 + $0x20] sm:$0xff]  ;;  %v167_v20 = vld [vmem:[%s546_s5 + $0x10] sm:$0xff]  ;;  %v168_v22 = vld [vmem:[%s546_s5 + $0x18] sm:$0xff] }
   0x8   :  { %v31_v21 = vld [vmem:[%s545_s1 + $0x20] sm:$0xff]  ;;  %v166_v23 = vld [vmem:[%s546_s5 + $0x8] sm:$0xff]  ;;  %v159_v0 = vld [vmem:[%s548_s2 + $0x10] sm:$0xff] }
   0x9   :  { %v289_v24 = vld [vmem:[%s547_s6] sm:$0xff]  ;;  %v32_v25 = vld [vmem:[%s545_s1 + $0x28] sm:$0xff]  ;;  %v163_v1 = vld [vmem:[%s548_s2 + $0x30] sm:$0xff] }
   0xa   :  { %65 = vperm.xlu1 %365, %v39_v7   ;;  %v165_v26 = vld [vmem:[%s546_s5] sm:$0xff]  ;;  %v290_v27 = vld [vmem:[%s547_s6 + $0x8] sm:$0xff]  ;;  %v160_v2 = vld [vmem:[%s548_s2 + $0x18] sm:$0xff] }
   0xb   :  { %337 = vmatmul.msk.f32.gmra.mxu0 %vm83_vm0, %v28_v8  ;;  %75 = vperm.xlu0 %364, %v41_v9   ;;  %v157_v60 = vld [vmem:[%s548_s2] sm:$0xff]  ;;  %v158_v62 = vld [vmem:[%s548_s2 + $0x8] sm:$0xff]  ;;  %v164_v3 = vld [vmem:[%s548_s2 + $0x38] sm:$0xff] }
   0xc   :  { %v161_v61 = vld [vmem:[%s548_s2 + $0x20] sm:$0xff]  ;;  %v162_v63 = vld [vmem:[%s548_s2 + $0x28] sm:$0xff] }
   0xd   :  { %343 = vmatmul.msk.f32.gmra.mxu2 %vm83_vm0, %v34_v10  ;;  %55 = vperm.xlu2 %366, %v37_v11  }
  0x12   :  { %45 = vperm.xlu1 %365, %v35_v12  }
  0x13   :  { %338 = vmatmul.msk.f32.gmra.mxu0 %vm83_vm0, %v29_v13  ;;  %50 = vperm.xlu0 %364, %v36_v14  }
  0x15   :  { %210 = vperm.xlu2 %366, %v172_v15  }
  0x1a   :  { %200 = vperm.xlu1 %365, %v170_v16  }
  0x1b   :  { %339 = vmatmul.msk.f32.gmra.mxu0 %vm83_vm0, %v30_v17  ;;  %205 = vperm.xlu0 %364, %v171_v18  }
  0x1d   :  { %195 = vperm.xlu2 %366, %v169_v19  }
  0x22   :  { %185 = vperm.xlu1 %365, %v167_v20  }
  0x23   :  { %340 = vmatmul.msk.f32.gmra.mxu0 %vm83_vm0, %v31_v21  ;;  %190 = vperm.xlu0 %364, %v168_v22  }
  0x25   :  { %180 = vperm.xlu2 %366, %v166_v23  }
  0x2a   :  { %293 = vperm.xlu1 %365, %v289_v24  }
  0x2b   :  { %341 = vmatmul.msk.f32.gmra.mxu0 %vm83_vm0, %v32_v25  ;;  %175 = vperm.xlu0 %364, %v165_v26  }
  0x2d   :  { %298 = vperm.xlu2 %366, %v290_v27  }
  0x5f   :  { %v61_v42 = vpop.permute.xlu2 %60 }
  0x67   :  { %v56_v49 = vpop.permute.xlu2 %55 }
  0x6f   :  { %v211_v8 = vpop.permute.xlu2 %210 }
  0x74   :  { %v71_v40 = vpop.permute.xlu1 %70 }
  0x75   :  { %v81_v29 = vpop.permute.xlu0 %80 }
  0x77   :  { %v196_v13 = vpop.permute.xlu2 %195 }
  0x7c   :  { %v66_v43 = vpop.permute.xlu1 %65 }
  0x7d   :  { %v76_v32 = vpop.permute.xlu0 %75 }
  0x80   :  { %v125_v28 = vpop.f32.mrf.mxu0 }
  0x84   :  { %v46_v52 = vpop.permute.xlu1 %45 }
  0x85   :  { %v51_v53 = vpop.permute.xlu0 %50  ;;  %v126_v56 = vadd.f32 %v125_v28, %v46_v52  ;;  %v181_v28 = vpop.permute.xlu2 %180 }
  0x87   :  { %v149_v59 = vmax.f32 %v126_v56, 0.0 }
  0x88   :  { %v128_v30 = vpop.f32.mrf.mxu0  ;;  %v143_v31 = vpop.f32.mrf.mxu2 }
  0x89   :  { %v144_v33 = vadd.f32 %v143_v31, %v76_v32  ;;  %v129_v54 = vadd.f32 %v128_v30, %v51_v53 }
  0x8b   :  { %v155_v37 = vmax.f32 %v144_v33, 0.0  ;;  %v150_v58 = vmax.f32 %v129_v54, 0.0 }
  0x8c   :  { %v201_v12 = vpop.permute.xlu1 %200 }
  0x8d   :  { %v206_v9 = vpop.permute.xlu0 %205 }
  0x90   :  { %v131_v34 = vpop.f32.mrf.mxu0  ;;  %v146_v35 = vpop.f32.mrf.mxu2 }
  0x91   :  { %v147_v36 = vadd.f32 %v146_v35, %v81_v29  ;;  %v132_v50 = vadd.f32 %v131_v34, %v56_v49 }
  0x93   :  { %v156_v38 = vmax.f32 %v147_v36, 0.0  ;;  %v151_v57 = vmax.f32 %v132_v50, 0.0  ;;  %v287_v36 = vld [vmem:[%s549_s3] sm:$0xff] }
  0x94   :  { %v186_v25 = vpop.permute.xlu1 %185 }
  0x95   :  { %246 = vmatpush.msra.mxu1 %v156_v38  ;;  %355 = vmatpush.msra.mxu3 %v156_v38  ;;  %v191_v17 = vpop.permute.xlu0 %190 }
  0x97   :  { %247 = vmatpush.msra.mxu1 %v155_v37  ;;  %356 = vmatpush.msra.mxu3 %v155_v37  ;;  %v288_v37 = vld [vmem:[%s549_s3 + $0x8] sm:$0xff] }
  0x98   :  { %v134_v39 = vpop.f32.mrf.mxu0 }
  0x99   :  { %v135_v47 = vadd.f32 %v134_v39, %v61_v42 }
  0x9b   :  { %v152_v55 = vmax.f32 %v135_v47, 0.0 }
  0x9c   :  { %v294_v38 = vpop.permute.xlu1 %293 }
  0x9d   :  { %v176_v31 = vpop.permute.xlu0 %175 }
  0xa0   :  { %v137_v41 = vpop.f32.mrf.mxu0 }
  0xa1   :  { %v138_v45 = vadd.f32 %v137_v41, %v66_v43  ;;  %v299_v41 = vpop.permute.xlu2 %298 }
  0xa3   :  { %v153_v51 = vmax.f32 %v138_v45, 0.0 }
  0xa8   :  { %v140_v44 = vpop.f32.mrf.mxu0 }
  0xa9   :  { %v141_v46 = vadd.f32 %v140_v44, %v71_v40 }
  0xab   :  { %v154_v48 = vmax.f32 %v141_v46, 0.0 }
  0xad   :  { %248 = vmatpush.msra.mxu1 %v154_v48  ;;  %357 = vmatpush.msra.mxu3 %v154_v48 }
  0xaf   :  { %249 = vmatpush.msra.mxu1 %v153_v51  ;;  %358 = vmatpush.msra.mxu3 %v153_v51 }
  0xb1   :  { %250 = vmatpush.msra.mxu1 %v152_v55  ;;  %359 = vmatpush.msra.mxu3 %v152_v55 }
  0xb3   :  { %251 = vmatpush.msra.mxu1 %v151_v57  ;;  %360 = vmatpush.msra.mxu3 %v151_v57 }
  0xb5   :  { %252 = vmatpush.msra.mxu1 %v150_v58  ;;  %361 = vmatpush.msra.mxu3 %v150_v58 }
  0xb7   :  { %253 = vmatpush.msra.mxu1 %v149_v59  ;;  %362 = vmatpush.msra.mxu3 %v149_v59 }
  0xb8   :  { %344 = vmatmul.msk.f32.vlgmr.msra.gmra.mxu1 %vm213_vm1, %v157_v60  ;;  %348 = vmatmul.msk.f32.vlgmr.msra.gmra.mxu3 %vm213_vm1, %v161_v61 }
  0xc0   :  { %345 = vmatmul.msk.f32.gmra.mxu1 %vm213_vm1, %v158_v62  ;;  %349 = vmatmul.msk.f32.gmra.mxu3 %vm213_vm1, %v162_v63 }
  0xc8   :  { %346 = vmatmul.msk.f32.gmra.mxu1 %vm213_vm1, %v159_v0  ;;  %350 = vmatmul.msk.f32.gmra.mxu3 %vm213_vm1, %v163_v1 }
  0xd0   :  { %347 = vmatmul.msk.f32.gmra.mxu1 %vm213_vm1, %v160_v2  ;;  %351 = vmatmul.msk.f32.gmra.mxu3 %vm213_vm1, %v164_v3 }
 0x135   :  { %v255_v4 = vpop.f32.mrf.mxu1 }
 0x136   :  { %v256_v32 = vadd.f32 %v255_v4, %v176_v31 }
 0x138   :  { %v279_v35 = vmax.f32 %v256_v32, 0.0 }
 0x13b   :  { %v267_v5 = vpop.f32.mrf.mxu3 }
 0x13c   :  { %v268_v21 = vadd.f32 %v267_v5, %v196_v13 }
 0x13d   :  { %v258_v6 = vpop.f32.mrf.mxu1 }
 0x13e   :  { %v283_v26 = vmax.f32 %v268_v21, 0.0  ;;  %v259_v29 = vadd.f32 %v258_v6, %v181_v28 }
 0x140   :  { %v280_v34 = vmax.f32 %v259_v29, 0.0 }
 0x143   :  { %v270_v7 = vpop.f32.mrf.mxu3 }
 0x144   :  { %v271_v18 = vadd.f32 %v270_v7, %v201_v12 }
 0x145   :  { %v261_v11 = vpop.f32.mrf.mxu1 }
 0x146   :  { %v284_v23 = vmax.f32 %v271_v18, 0.0  ;;  %v262_v27 = vadd.f32 %v261_v11, %v186_v25 }
 0x148   :  { %v281_v33 = vmax.f32 %v262_v27, 0.0 }
 0x14b   :  { %v273_v10 = vpop.f32.mrf.mxu3 }
 0x14c   :  { %v274_v15 = vadd.f32 %v273_v10, %v206_v9 }
 0x14d   :  { %v264_v20 = vpop.f32.mrf.mxu1 }
 0x14e   :  { %v285_v22 = vmax.f32 %v274_v15, 0.0  ;;  %v265_v24 = vadd.f32 %v264_v20, %v191_v17 }
 0x150   :  { %v282_v30 = vmax.f32 %v265_v24, 0.0 }
 0x153   :  { %v276_v14 = vpop.f32.mrf.mxu3 }
 0x154   :  { %v277_v16 = vadd.f32 %v276_v14, %v211_v8 }
 0x156   :  { %v286_v19 = vmax.f32 %v277_v16, 0.0 }
 0x158   :  { %315 = vmatpush.msrb.mxu2 %v286_v19 }
 0x15a   :  { %316 = vmatpush.msrb.mxu2 %v285_v22 }
 0x15c   :  { %317 = vmatpush.msrb.mxu2 %v284_v23 }
 0x15e   :  { %318 = vmatpush.msrb.mxu2 %v283_v26 }
 0x160   :  { %319 = vmatpush.msrb.mxu2 %v282_v30 }
 0x162   :  { %320 = vmatpush.msrb.mxu2 %v281_v33 }
 0x164   :  { %321 = vmatpush.msrb.mxu2 %v280_v34 }
 0x166   :  { %322 = vmatpush.msrb.mxu2 %v279_v35 }
 0x167   :  { %352 = vmatmul.msk.f32.vlgmr.msrb.gmra.mxu2 %vm213_vm1, %v287_v36 }
 0x16f   :  { %353 = vmatmul.msk.f32.gmra.mxu2 %vm213_vm1, %v288_v37 }
 0x1ea   :  { %v324_v39 = vpop.f32.mrf.mxu2 }
 0x1eb   :  { %v325_v40 = vadd.f32 %v324_v39, %v294_v38 }
 0x1ed   :  { %330 = vst [vmem:[%s550_s7] sm:$0xff] %v325_v40 }
 0x1f2   :  { %v327_v42 = vpop.f32.mrf.mxu2 }
 0x1f3   :  { %v328_v43 = vadd.f32 %v327_v42, %v299_v41 }
 0x1f5   :  { %331 = vst [vmem:[%s550_s7 + $0x8] sm:$0xff] %v328_v43 }

</bundles_post_ra>
